<compile_context>
chip_gen: v7x
topology: tpu7x:2x2x1
jax: 0.10.0
libtpu: 0.0.40
codegen_flags: <defaults>
</compile_context>

<pallas_src>
import functools
from functools import partial

import jax
import jax.numpy as jnp
from jax import lax
from jax.experimental import pallas as pl
from jax.experimental.pallas import tpu as pltpu

D_IN, D_HID, D_OUT = 10, 50, 1


# ---------------------------------------------------------------------------
# Kernel
# ---------------------------------------------------------------------------
def _mlp_kernel(x_ref, w1_ref, b1_ref, w2_ref, b2_ref, o_ref):
    w1 = w1_ref[...]                                    # (50, 10)  MXU dtype (bf16/f32)
    x = x_ref[...].astype(w1.dtype)                     # (TB, 10)  cast in VMEM for the MXU
    # h[j, b] = sum_k W1[j, k] * x[b, k]  -> (50, TB): batch stays on the lane axis.
    h = lax.dot_general(w1, x, (((1,), (1,)), ((), ())),
                        preferred_element_type=jnp.float32)
    h = jnp.maximum(h + b1_ref[...], 0.0)               # f32 bias + ReLU epilogue, (50,1) bcast
    # fc2 as a tiny (1,50)x(50,TB) matmul; keep h in f32, upcast the small W2 instead.
    y = jnp.dot(w2_ref[...].astype(jnp.float32), h,
                preferred_element_type=jnp.float32)     # (1, TB) lane-dense
    o_ref[...] = (y + b2_ref[...]).astype(o_ref.dtype)


# ---------------------------------------------------------------------------
# Parameter packing (one-time) and tiling heuristics
# ---------------------------------------------------------------------------
def pack_params(w1, b1, w2, b2, *, dtype=jnp.bfloat16):
    """One-time packing of PyTorch nn.Linear-shaped params.

    w1: (50, 10), b1: (50,), w2: (1, 50), b2: (1,).
    Weights are cast to the MXU input dtype (bf16 by default, halving weight HBM
    bytes and enabling bf16-native MXU on all generations); biases stay f32
    column vectors because the bias+ReLU epilogue runs in f32.
    """
    return (jnp.asarray(w1, dtype),
            jnp.asarray(b1, jnp.float32).reshape(D_HID, 1),
            jnp.asarray(w2, dtype),
            jnp.asarray(b2, jnp.float32).reshape(D_OUT, 1))


@functools.lru_cache(maxsize=None)
def _vmem_capacity_bytes():
    try:
        return int(pltpu.get_tpu_info().vmem_capacity_bytes)   # 128 MiB v5e/v6e, 64 MiB v7x
    except Exception:
        return 64 * 1024 * 1024                                # conservative fallback


def _pick_tiling(batch, x_itemsize, w_itemsize, max_block_b=None):
    """Choose (vmem_limit_bytes, batch tile) from device VMEM and dtypes."""
    vmem_cap = _vmem_capacity_bytes()
    vmem_limit = int(min((vmem_cap * 3) // 4, 96 * 1024 * 1024))   # 96 MiB v5e/v6e, 48 MiB v7x
    cast_bytes = (128 * w_itemsize + 64) if x_itemsize != w_itemsize else 64
    per_row = (2 * 128 * x_itemsize      # double-buffered x tile (lanes 10->128)
               + cast_bytes              # in-kernel cast copy / transpose staging of x tile
               + 2 * 56 * 4              # (50, TB) f32 hidden temps (sublanes 50->56)
               + 3 * 8 * 4)              # (1, TB) f32 out block (dbl-buffered) + y temp
    budget = vmem_limit - (6 << 20)      # headroom: weights, semaphores, compiler scratch
    tb = budget // per_row
    if max_block_b is not None:
        tb = min(tb, max_block_b)
    # Aim for >= 2 grid steps so the "parallel" batch axis feeds both v7x TensorCores
    # (neutral on single-core v5e/v6e).
    tb = min(tb, ((batch + 1) // 2 + 127) // 128 * 128)
    tb = max(128, (tb // 128) * 128)
    if tb >= batch:
        tb = batch                       # single full-extent (possibly ragged) block
    return vmem_limit, int(tb)


# ---------------------------------------------------------------------------
# Forward pass
# ---------------------------------------------------------------------------
@partial(jax.jit, static_argnames=("block_b", "vmem_limit"))
def _forward(x, w1, b1c, w2, b2c, *, block_b, vmem_limit):
    batch = x.shape[0]
    grid = (pl.cdiv(batch, block_b),)
    resident = lambda i: (0, 0)          # weights/biases: same block every grid step
    yT = pl.pallas_call(
        _mlp_kernel,
        out_shape=jax.ShapeDtypeStruct((D_OUT, batch), jnp.float32),
        grid=grid,
        in_specs=[
            pl.BlockSpec((block_b, D_IN), lambda i: (i, 0)),   # x tile, pipelined (ragged tail masked)
            pl.BlockSpec((D_HID, D_IN), resident),             # W1
            pl.BlockSpec((D_HID, 1), resident),                # b1 (f32 column)
            pl.BlockSpec((D_OUT, D_HID), resident),            # W2
            pl.BlockSpec((D_OUT, 1), resident),                # b2 (f32 column)
        ],
        out_specs=pl.BlockSpec((D_OUT, block_b), lambda i: (0, i)),   # lane-dense output
        compiler_params=pltpu.CompilerParams(
            dimension_semantics=("parallel",),   # shards batch tiles across v7x's 2 TCs
            vmem_limit_bytes=vmem_limit,
        ),
    )(x, w1, b1c, w2, b2c)
    return yT.T                                                # (B, 1); fuses under jit


def simple_nn_forward(x, packed, *, max_block_b=None):
    """x: (B, 10) (f32 or bf16) -> (B, 1) f32.  `packed` = pack_params(...)."""
    w1, b1c, w2, b2c = packed
    vmem_limit, block_b = _pick_tiling(x.shape[0], x.dtype.itemsize,
                                       w1.dtype.itemsize, max_block_b)
    return _forward(x, w1, b1c, w2, b2c, block_b=block_b, vmem_limit=vmem_limit)


def _reference(x, w1, b1, w2, b2):
    hp = jax.lax.Precision.HIGHEST
    h = jnp.maximum(jnp.dot(x, w1.T, precision=hp) + b1, 0.0)
    return jnp.dot(h, w2.T, precision=hp) + b2


# ---------------------------------------------------------------------------
# Self-test
# ---------------------------------------------------------------------------
if __name__ == "__main__":
    key = jax.random.PRNGKey(0)
    kx, k1, k2, k3, k4, kx2 = jax.random.split(key, 6)

    # Deterministic synthetic parameters (PyTorch nn.Linear shapes).
    w1 = jax.random.normal(k1, (D_HID, D_IN), dtype=jnp.float32) * 0.1
    b1 = jax.random.normal(k2, (D_HID,), dtype=jnp.float32) * 0.1
    w2 = jax.random.normal(k3, (D_OUT, D_HID), dtype=jnp.float32) * 0.1
    b2 = jax.random.normal(k4, (D_OUT,), dtype=jnp.float32) * 0.1

    # Path 1: f32 weights + f32 x, tiny batch -> single (ragged) tile, tight check.
    B = 8
    x = jax.random.normal(kx, (B, D_IN), dtype=jnp.float32)
    packed_f32 = pack_params(w1, b1, w2, b2, dtype=jnp.float32)
    out = jax.block_until_ready(simple_nn_forward(x, packed_f32))
    ref = _reference(x, w1, b1, w2, b2)
    assert out.shape == (B, D_OUT)
    assert jnp.allclose(out, ref, atol=1e-4, rtol=1e-4), "f32 path mismatch"

    # Path 2: bf16 weights + bf16 x (default serving config), small tile cap ->
    # multi-step pipelined grid with a ragged last tile; bf16-appropriate tolerance.
    B2 = 257
    x2 = jax.random.normal(kx2, (B2, D_IN), dtype=jnp.float32)
    packed_bf16 = pack_params(w1, b1, w2, b2)                  # bf16 by default
    out2 = jax.block_until_ready(
        simple_nn_forward(x2.astype(jnp.bfloat16), packed_bf16, max_block_b=128))
    ref2 = _reference(x2, w1, b1, w2, b2)
    assert out2.shape == (B2, D_OUT)
    assert jnp.allclose(out2, ref2, atol=5e-2, rtol=5e-2), "bf16 path mismatch"

    print("KERNEL_OK")
</pallas_src>

<mosaic_0001>
module attributes {stable_mosaic.version = 11 : i64} {
  func.func @_mlp_kernel(%arg0: i32, %arg1: memref<8x10xf32, #tpu.memory_space<vmem>>, %arg2: memref<50x10xf32, #tpu.memory_space<vmem>>, %arg3: memref<50x1xf32, #tpu.memory_space<vmem>>, %arg4: memref<1x50xf32, #tpu.memory_space<vmem>>, %arg5: memref<1x1xf32, #tpu.memory_space<vmem>>, %arg6: memref<1x8xf32, #tpu.memory_space<vmem>>) attributes {dimension_semantics = [#tpu.dimension_semantics<parallel>], iteration_bounds = array<i64: 1>, scalar_prefetch = 0 : i64, scratch_operands = 0 : i64, tpu.core_type = #tpu.core_type<tc>, window_params = [{transform_indices = @transform_0, window_bounds = array<i64: 8, 10>}, {pipeline_mode = #tpu.pipeline_mode<synchronous>, transform_indices = @transform_1, window_bounds = array<i64: 50, 10>}, {pipeline_mode = #tpu.pipeline_mode<synchronous>, transform_indices = @transform_2, window_bounds = array<i64: 50, 1>}, {pipeline_mode = #tpu.pipeline_mode<synchronous>, transform_indices = @transform_3, window_bounds = array<i64: 1, 50>}, {pipeline_mode = #tpu.pipeline_mode<synchronous>, transform_indices = @transform_4, window_bounds = array<i64: 1, 1>}, {transform_indices = @transform_5, window_bounds = array<i64: 1, 8>}]} {
    %c0 = arith.constant 0 : index
    %c0_0 = arith.constant 0 : index
    %0 = vector.load %arg2[%c0, %c0_0] : memref<50x10xf32, #tpu.memory_space<vmem>>, vector<50x10xf32>
    %c0_1 = arith.constant 0 : index
    %c0_2 = arith.constant 0 : index
    %1 = vector.load %arg1[%c0_1, %c0_2] : memref<8x10xf32, #tpu.memory_space<vmem>>, vector<8x10xf32>
    %cst = arith.constant dense<0.000000e+00> : vector<50x8xf32>
    %2 = tpu.matmul %0, %1, %cst {dimension_numbers = #tpu.dot_dimension_numbers<[1], [1], [0], [0], [0, 0, 1, 0], [], []>} : vector<50x10xf32>, vector<8x10xf32>, vector<50x8xf32> -> vector<50x8xf32>
    %c0_3 = arith.constant 0 : index
    %c0_4 = arith.constant 0 : index
    %3 = vector.load %arg3[%c0_3, %c0_4] : memref<50x1xf32, #tpu.memory_space<vmem>>, vector<50x1xf32>
    %4 = vector.broadcast %3 : vector<50x1xf32> to vector<50x8xf32>
    %5 = arith.addf %2, %4 : vector<50x8xf32>
    %cst_5 = arith.constant 0.000000e+00 : f32
    %6 = vector.broadcast %cst_5 : f32 to vector<50x8xf32>
    %7 = arith.maximumf %5, %6 : vector<50x8xf32>
    %c0_6 = arith.constant 0 : index
    %c0_7 = arith.constant 0 : index
    %8 = vector.load %arg4[%c0_6, %c0_7] : memref<1x50xf32, #tpu.memory_space<vmem>>, vector<1x50xf32>
    %cst_8 = arith.constant dense<0.000000e+00> : vector<1x8xf32>
    %9 = tpu.matmul %8, %7, %cst_8 {dimension_numbers = #tpu.dot_dimension_numbers<[1], [0], [0], [1], [0, 0, 1, 1], [], []>} : vector<1x50xf32>, vector<50x8xf32>, vector<1x8xf32> -> vector<1x8xf32>
    %c0_9 = arith.constant 0 : index
    %c0_10 = arith.constant 0 : index
    %10 = vector.load %arg5[%c0_9, %c0_10] : memref<1x1xf32, #tpu.memory_space<vmem>>, vector<1x1xf32>
    %11 = vector.broadcast %10 : vector<1x1xf32> to vector<1x8xf32>
    %12 = arith.addf %9, %11 : vector<1x8xf32>
    %c0_11 = arith.constant 0 : index
    %c0_12 = arith.constant 0 : index
    %13 = vector.load %arg6[%c0_11, %c0_12] : memref<1x8xf32, #tpu.memory_space<vmem>>, vector<1x8xf32>
    tpu.vector_store %arg6[%c0_11, %c0_12], %12 {strides = array<i32>} : memref<1x8xf32, #tpu.memory_space<vmem>>, vector<1x8xf32>,
    return
  }
  func.func @transform_0(%arg0: i32) -> (i32, i32) {
    %c0_i32 = arith.constant 0 : i32
    %c0_i32_0 = arith.constant 0 : i32
    return %arg0, %c0_i32 : i32, i32
  }
  func.func @transform_1(%arg0: i32) -> (i32, i32) {
    %c0_i32 = arith.constant 0 : i32
    %c0_i32_0 = arith.constant 0 : i32
    %c0_i32_1 = arith.constant 0 : i32
    return %c0_i32, %c0_i32_0 : i32, i32
  }
  func.func @transform_2(%arg0: i32) -> (i32, i32) {
    %c0_i32 = arith.constant 0 : i32
    %c0_i32_0 = arith.constant 0 : i32
    %c0_i32_1 = arith.constant 0 : i32
    return %c0_i32, %c0_i32_0 : i32, i32
  }
  func.func @transform_3(%arg0: i32) -> (i32, i32) {
    %c0_i32 = arith.constant 0 : i32
    %c0_i32_0 = arith.constant 0 : i32
    %c0_i32_1 = arith.constant 0 : i32
    return %c0_i32, %c0_i32_0 : i32, i32
  }
  func.func @transform_4(%arg0: i32) -> (i32, i32) {
    %c0_i32 = arith.constant 0 : i32
    %c0_i32_0 = arith.constant 0 : i32
    %c0_i32_1 = arith.constant 0 : i32
    return %c0_i32, %c0_i32_0 : i32, i32
  }
  func.func @transform_5(%arg0: i32) -> (i32, i32) {
    %c0_i32 = arith.constant 0 : i32
    %c0_i32_0 = arith.constant 0 : i32
    return %c0_i32, %arg0 : i32, i32
  }
}

</mosaic_0001>

<bundles_post_ra>
// kernel: _forward.1
= control target key start
LH: loop header
LB: loop body
LE: loop exit
PB: predicated region body
PF: predicated region fallthrough
CT: control target
= control target key end

     0   :  { %s540_s0 = inlined_call_operand.vmem [shape: f32[8,10], index: 0, kind: input, shape index: {}]   ;;  %s541_s1 = inlined_call_operand.vmem [shape: f32[50,10], index: 1, kind: input, shape index: {}]   ;;  %s542_s2 = inlined_call_operand.vmem [shape: f32[50,1], index: 2, kind: input, shape index: {}]   ;;  %s543_s3 = inlined_call_operand.vmem [shape: f32[1,50], index: 3, kind: input, shape index: {}]   ;;  %s544_s4 = inlined_call_operand.<no memory space> [shape: f32[1,1], index: 4, kind: input, shape index: {}]   ;;  %s545_s5 = inlined_call_operand.hbm [shape: f32[1,8], index: 5, kind: output, shape index: {}]  }
   0x1   :  { %v10_v0 = vstv %s544_s4 }
   0x2   :  { %11 = vst [vmem:[#allocation2] sm:$0x1] %v10_v0 }
   0x3   :  { %v30_v1 = vld [vmem:[%s540_s0] sm:$0xff]  ;;  %vm73_vm0 = vcmask 80896   ;;  %v416_v2 = vmov 0.0   ;;  %vm417_vm1 = vmmov 0   ;;  %v418_v4 = vmov 0   ;;  %v33_v6 = vld [vmem:[%s542_s2 + $0x10] sm:$0xff] }
   0x4   :  { %336 = vmatprep.subr.mxu0 %v416_v2  ;;  %338 = vmatprep.mubr.msk.f32.mxu0 %vm417_vm1, %v416_v2  ;;  %v23_v3 = vld [vmem:[%s541_s1] sm:$0xff]  ;;  %v32_v7 = vld [vmem:[%s542_s2 + $0x8] sm:$0xff]  ;;  %v34_v8 = vld [vmem:[%s542_s2 + $0x18] sm:$0xff] }
   0x5   :  { %337 = vmatpush3.xpose.msk.msra.mxu0 %vm73_vm0, %v30_v1  ;;  %390 = vset.pattern.permute.xlu0 %v418_v4  ;;  %v31_v5 = vld [vmem:[%s542_s2] sm:$0xff] }
   0x6   :  { %40 = vperm.xlu0 %390, %v31_v5   ;;  %391 = vset.pattern.permute.xlu1 %v418_v4 }
   0x7   :  { %50 = vperm.xlu1 %391, %v33_v6   ;;  %373 = vmatprep.mubr.msk.f32.mxu1 %vm417_vm1, %v416_v2 }
   0x8   :  { %339 = vmatmul.mubr.msk.f32.vlgmr.msra.gmra.mrb[0].mxu0 %vm73_vm0, %v23_v3 }
   0x9   :  { %12 = vsyncpa [#allocation4], 0  ;;  %341 = vmatprep.mubr.msk.f32.mxu0 %vm417_vm1, %v416_v2  ;;  %v24_v9 = vld [vmem:[%s541_s1 + $0x8] sm:$0xff]  ;;  %v35_v10 = vld [vmem:[%s542_s2 + $0x20] sm:$0xff]  ;;  %v419_v19 = vmov 0.0|0.0   ;;  %vm220_vm2 = vcmask 1041408   ;;  %v212_v59 = vlaneseq }
   0xa   :  { %45 = vperm.xlu0 %390, %v32_v7   ;;  %v36_v11 = vld [vmem:[%s542_s2 + $0x28] sm:$0xff]  ;;  %v25_v12 = vld [vmem:[%s541_s1 + $0x10] sm:$0xff]  ;;  %v206_v14 = vld [vmem:[#allocation2] sm:$0x1]  ;;  %376 = vmatprep.subr.bf16.mxu1 %v419_v19  ;;  %vm216_vm3 = vcmask 408576   ;;  %s420_s23 = smov [#allocation3]  }
   0xb   :  { %55 = vperm.xlu1 %391, %v34_v8   ;;  %v37_v13 = vld [vmem:[%s542_s2 + $0x30] sm:$0x3]  ;;  %v26_v15 = vld [vmem:[%s541_s1 + $0x18] sm:$0xff]  ;;  %v27_v16 = vld [vmem:[%s541_s1 + $0x20] sm:$0xff]  ;;  %v213_v60 = vshrl.u32 %v212_v59, 7  ;;  %s302_s4 = sshll.u32 %s420_s23, 4  ;;  %s303_s4 = int_to_ptr.vmem [resolvable:$true] %s302_s4 }
   0xc   :  { %342 = vmatmul.mubr.msk.f32.gmra.mrb[2].mxu0 %vm73_vm0, %v24_v9  ;;  %v28_v17 = vld [vmem:[%s541_s1 + $0x28] sm:$0xff]  ;;  %v29_v18 = vld [vmem:[%s541_s1 + $0x30] sm:$0x3]  ;;  %v205_v58 = vld [vmem:[%s543_s3] sm:$0x1]  ;;  %vm294_vm4 = vcmask 57344   ;;  %p397_p1 = scmp.lt.s32.totalorder %s303_s4, %s303_s4 }
   0xd   :  { %344 = vmatprep.mubr.msk.f32.mxu0 %vm417_vm1, %v416_v2  ;;  %v214_v61 = vsub.s32 0, %v213_v60  ;;  %s392_s24 = scalar_lea.vmem %s303_s4, 16  ;;  %s396_s0 = scalar_lea.vmem %s303_s4, 32 }
   0xe   :  { %60 = vperm.xlu0 %390, %v35_v10   ;;  %p393_p0 = scmp.ne.s32.totalorder %s303_s4, %s392_s24  ;;  %p398_p2 = scmp.lt.s32.totalorder %s396_s0, %s392_s24 }
   0xf   :  { %65 = vperm.xlu1 %391, %v36_v11  }
  0x10   :  { %345 = vmatmul.mubr.msk.f32.gmra.mrb[4].mxu0 %vm73_vm0, %v25_v12  ;;  %p399_p3 = por %p398_p2, %p397_p1 }
  0x11   :  { %347 = vmatprep.mubr.msk.f32.mxu0 %vm417_vm1, %v416_v2 }
  0x12   :  { %70 = vperm.xlu0 %390, %v37_v13   ;;  %p400_p4 = pnand %p399_p3, %p393_p0 }
  0x13   :  { %209 = vperm.xlu1 %391, %v206_v14  }
  0x14   :  { %348 = vmatmul.mubr.msk.f32.gmra.mrb[6].mxu0 %vm73_vm0, %v26_v15 }
  0x15   :  { %350 = vmatprep.mubr.msk.f32.mxu0 %vm417_vm1, %v416_v2 }
  0x18   :  { %351 = vmatmul.mubr.msk.f32.gmra.mrb[8].mxu0 %vm73_vm0, %v27_v16 }
  0x19   :  { %353 = vmatprep.mubr.msk.f32.mxu0 %vm417_vm1, %v416_v2 }
  0x1c   :  { %354 = vmatmul.mubr.msk.f32.gmra.mrb[10].mxu0 %vm73_vm0, %v28_v17 }
  0x1d   :  { %356 = vmatprep.mubr.msk.f32.mxu0 %vm417_vm1, %v416_v2 }
  0x20   :  { %357 = vmatmul.mubr.msk.f32.gmra.mrb[12].mxu0 %vm73_vm0, %v29_v18 }
  0x85   :  { %v41_v20 = vpop.permute.xlu0 %40 }
  0x86   :  { %v51_v28 = vpop.permute.xlu1 %50 }
  0x89   :  { %v46_v24 = vpop.permute.xlu0 %45 }
  0x8a   :  { %v56_v35 = vpop.permute.xlu1 %55 }
  0x8d   :  { %v61_v44 = vpop.permute.xlu0 %60 }
  0x8e   :  { %v66_v46 = vpop.permute.xlu1 %65 }
  0x91   :  { %v71_v52 = vpop.permute.xlu0 %70 }
  0x92   :  { %v210_v62 = vpop.permute.xlu1 %209 }
  0x93   :  { %v215_v63 = vrot.slane %v210_v62, %v214_v61 }
  0xdb   :  { %v164_v21 = vpop.f32.mrb[0].mxu0 }
  0xdc   :  { %v340_v22 = vpop.f32.mrb[1].mxu0  ;;  %v165_v23 = vadd.f32 %v164_v21, %v41_v20 }
  0xde   :  { %v198_v29 = vmax.f32 %v165_v23, 0.0 }
  0xdf   :  { %v169_v25 = vpop.f32.mrb[2].mxu0 }
  0xe0   :  { %v170_v26 = vadd.f32 %v169_v25, %v46_v24  ;;  %v343_v27 = vpop.f32.mrb[3].mxu0 }
  0xe2   :  { %v199_v30 = vmax.f32 %v170_v26, 0.0 }
  0xe3   :  { %v174_v31 = vpop.f32.mrb[4].mxu0 }
  0xe4   :  { %v346_v32 = vpop.f32.mrb[5].mxu0  ;;  %v377_v33 = vpack.c.bf16 %v199_v30, %v198_v29  ;;  %v175_v34 = vadd.f32 %v174_v31, %v51_v28 }
  0xe6   :  { %378 = vmatpush3.bf16.msra.mxu1 %v377_v33  ;;  %v200_v39 = vmax.f32 %v175_v34, 0.0 }
  0xe7   :  { %v179_v36 = vpop.f32.mrb[6].mxu0  ;;  %379 = vmatprep.subr.bf16.mxu1 %v419_v19 }
  0xe8   :  { %v180_v37 = vadd.f32 %v179_v36, %v56_v35  ;;  %v349_v38 = vpop.f32.mrb[7].mxu0 }
  0xea   :  { %v201_v40 = vmax.f32 %v180_v37, 0.0 }
  0xeb   :  { %v184_v41 = vpop.f32.mrb[8].mxu0 }
  0xec   :  { %v380_v42 = vpack.c.bf16 %v201_v40, %v200_v39  ;;  %v352_v43 = vpop.f32.mrb[9].mxu0  ;;  %v185_v45 = vadd.f32 %v184_v41, %v61_v44 }
  0xee   :  { %381 = vmatpush3.bf16.msra.mxu1 %v380_v42  ;;  %v202_v50 = vmax.f32 %v185_v45, 0.0 }
  0xef   :  { %v189_v47 = vpop.f32.mrb[10].mxu0  ;;  %382 = vmatprep.subr.bf16.mxu1 %v419_v19 }
  0xf0   :  { %v190_v48 = vadd.f32 %v189_v47, %v66_v46  ;;  %v355_v49 = vpop.f32.mrb[11].mxu0 }
  0xf2   :  { %v203_v51 = vmax.f32 %v190_v48, 0.0 }
  0xf3   :  { %v194_v53 = vpop.f32.mrb[12].mxu0 }
  0xf4   :  { %v383_v54 = vpack.c.bf16 %v203_v51, %v202_v50  ;;  %v195_v55 = vadd.f32 %v194_v53, %v71_v52  ;;  %v358_v56 = vpop.f32.mrb[13].mxu0 }
  0xf6   :  { %384 = vmatpush3.bf16.msra.mxu1 %v383_v54  ;;  %v204_v57 = vmax.f32 %v195_v55, 0.0 }
  0xf7   :  { %371 = vmatprep.subr.mxu1 %v416_v2 }
  0xfa   :  { %372 = vmatpush3.msk.msra.mxu1 %vm220_vm2, %v204_v57 }
  0xfb   :  { %374 = vmatmul.mubr.msk.f32.vlgmr.msra.gmra.mrb[0].mxu1 %vm216_vm3, %v205_v58 }
 0x1ce   :  { %v290_v0 = vpop.f32.mrb[0].mxu1 }
 0x1cf   :  { %v291_v1 = vadd.f32 %v290_v0, %v215_v63  ;;  %v375_v2 = vpop.f32.mrb[1].mxu1 }
 0x1d1   :  { %295 = vst.msk [vmem:[#allocation3] sm:$0x1] %vm294_vm4, %v291_v1 }
 0x1d2   :  { %403 = shalt.err (!%p400_p4)
}
 0x1d3   :  { %s404_s26 = scalar_lea.hbm %s545_s5, 16 }
 0x1d4   :  { %p405_p5 = scmp.ne.s32.totalorder %s545_s5, %s404_s26  ;;  %p408_p6 = scmp.lt.u32.totalorder %s404_s26, %s545_s5 }
 0x1d6   :  { %p410_p7 = pnand %p408_p6, %p405_p5 }
 0x1d8   :  { %413 = shalt.err (!%p410_p7)
}
 0x1d9   :  { %305 = dma.vmem_to_hbm [thread:$0]  %s303_s4, 16, %s545_s5, [#allocation4]  }
 0x1da   :  { %414 = dma.done.wait [#allocation4], 16  }
 0x1db   :  { %415 = vsyncadd [#allocation4], 4294967280 }
 0x1dc   :  { %309 = vsyncpa [#allocation4], 1 }

</bundles_post_ra>
